<compile_context>
chip_gen: v7x
topology: tpu7x:2x2x1
jax: 0.10.0
libtpu: 0.0.40
codegen_flags: <defaults>
</compile_context>

<pallas_src>
import jax
import jax.numpy as jnp
from jax import lax
from jax.experimental import pallas as pl
from jax.experimental.pallas import tpu as pltpu

BLOCK_SIZE = 64          # max sequence length (causal mask buffer size)
EMBED = 64               # embed_size
NUM_HEADS = 4
HEAD_SIZE = EMBED // NUM_HEADS   # 16
DROPOUT_RATE = 0.1       # eval-mode -> identity (see TODOs below)


def mha_kernel(x_ref, wqkv_ref, wp_ref, bp_ref, o_ref):
    """Whole problem in one grid step.

    x_ref    : (B, T, C)   f32 activations
    wqkv_ref : (C, 3C)     bf16 fused q|k|v projection (columns: [q | k | v])
    wp_ref   : (C, C)      bf16 output projection weight, (in, out) layout
    bp_ref   : (1, C)      f32 output projection bias
    o_ref    : (B, T, C)   f32 output
    """
    B, T, C = x_ref.shape
    scale = C ** (-0.5)    # PyTorch Head uses full embed dim C, not head_size

    # Fused QKV projection over the whole (B*T, C) activation block.
    # bf16 MXU operands, f32 accumulation.
    x2d = x_ref[...].reshape(B * T, C).astype(jnp.bfloat16)   # leading-dim merge (free)
    qkv = jnp.dot(x2d, wqkv_ref[...],
                  preferred_element_type=jnp.float32)         # (B*T, 3C) f32
    qkv3 = qkv.reshape(B, T, 3 * C)                           # leading-dim split (free)

    # Additive causal mask (large negative instead of -inf + select).
    row = lax.broadcasted_iota(jnp.int32, (T, T), 0)
    col = lax.broadcasted_iota(jnp.int32, (T, T), 1)
    neg_mask = jnp.where(col <= row, 0.0, -1e30).astype(jnp.float32)[None]  # (1, T, T)

    wp = wp_ref[...]                                          # (C, C) bf16

    # Per-head attention via static lane slices (no transposes / XLU shuffles).
    # Head-concat + output projection folded into per-head accumulation:
    #   cat_h(o_h) @ Wp == sum_h o_h @ Wp[h*hs:(h+1)*hs, :]
    y = jnp.zeros((B * T, C), jnp.float32)
    for h in range(NUM_HEADS):
        lo = h * HEAD_SIZE
        hi = lo + HEAD_SIZE
        q_h = qkv3[:, :, lo:hi].astype(jnp.bfloat16)          # (B, T, hs)
        k_h = qkv3[:, :, C + lo:C + hi].astype(jnp.bfloat16)
        v_h = qkv3[:, :, 2 * C + lo:2 * C + hi].astype(jnp.bfloat16)

        s = jnp.einsum('btd,bsd->bts', q_h, k_h,
                       preferred_element_type=jnp.float32) * scale + neg_mask
        # Softmax entirely in f32 (VPU sub/exp, EUP approximate reciprocal).
        s = s - jnp.max(s, axis=-1, keepdims=True)
        p = jnp.exp(s)
        p = p * pl.reciprocal(jnp.sum(p, axis=-1, keepdims=True), approx=True)

        # TODO(synk): dropout (rate 0.1) on attention weights omitted —
        # eval/inference semantics (identity).

        o_h = jnp.einsum('bts,bsd->btd', p.astype(jnp.bfloat16), v_h,
                         preferred_element_type=jnp.float32)  # (B, T, hs) f32
        y = y + jnp.dot(o_h.reshape(B * T, HEAD_SIZE).astype(jnp.bfloat16),
                        wp[lo:hi, :], preferred_element_type=jnp.float32)

    y = y + bp_ref[...]
    # TODO(synk): output dropout (rate 0.1) omitted — eval/inference identity.
    o_ref[...] = y.reshape(B, T, C).astype(o_ref.dtype)


def multi_head_attention(x, wqkv, wp_t, bp):
    """x: (B, T, C) f32; wqkv: (C, 3C); wp_t: (C, C) (in, out); bp: (1, C)."""
    B, T, C = x.shape
    assert T <= BLOCK_SIZE

    # One-time weight cast to bf16 (halves weight DMA / vreg footprint; MXU
    # accumulates in f32 via preferred_element_type inside the kernel).
    wqkv_bf = wqkv.astype(jnp.bfloat16)
    wp_bf = wp_t.astype(jnp.bfloat16)

    return pl.pallas_call(
        mha_kernel,
        out_shape=jax.ShapeDtypeStruct((B, T, C), x.dtype),
        grid=(1,),
        in_specs=[
            pl.BlockSpec((B, T, C), lambda b: (0, 0, 0)),
            pl.BlockSpec((C, 3 * C), lambda b: (0, 0)),
            pl.BlockSpec((C, C), lambda b: (0, 0)),
            pl.BlockSpec((1, C), lambda b: (0, 0)),
        ],
        out_specs=pl.BlockSpec((B, T, C), lambda b: (0, 0, 0)),
        compiler_params=pltpu.CompilerParams(
            dimension_semantics=("arbitrary",)),
    )(x, wqkv_bf, wp_bf, bp)


def reference_mha(x, wq, wk, wv, wp_t, bp):
    """Plain-JAX f32 reference mirroring the PyTorch forward (eval mode)."""
    B, T, C = x.shape
    scale = C ** (-0.5)

    def split(m):  # (B, T, C) -> (B, H, T, hs)
        return jnp.transpose(m.reshape(B, T, NUM_HEADS, HEAD_SIZE), (0, 2, 1, 3))

    q = split(x @ wq)
    k = split(x @ wk)
    v = split(x @ wv)
    wei = jnp.einsum('bhtd,bhsd->bhts', q, k) * scale
    mask = jnp.tril(jnp.ones((T, T), dtype=bool))
    wei = jnp.where(mask, wei, -jnp.inf)
    p = jax.nn.softmax(wei, axis=-1)
    out = jnp.einsum('bhts,bhsd->bhtd', p, v)
    out = jnp.transpose(out, (0, 2, 1, 3)).reshape(B, T, C)
    return out @ wp_t + bp[0]


if __name__ == "__main__":
    key = jax.random.PRNGKey(0)
    k_x, k_q, k_k, k_v, k_p, k_b = jax.random.split(key, 6)

    B, T, C = 2, 8, EMBED   # seq=8 <= block_size=64

    x = jax.random.normal(k_x, (B, T, C), dtype=jnp.float32)

    # nn.Linear-style uniform init, bound = 1/sqrt(in_features)
    bound = 1.0 / (EMBED ** 0.5)
    wq = jax.random.uniform(k_q, (C, C), jnp.float32, -bound, bound)
    wk = jax.random.uniform(k_k, (C, C), jnp.float32, -bound, bound)
    wv = jax.random.uniform(k_v, (C, C), jnp.float32, -bound, bound)
    wp_t = jax.random.uniform(k_p, (C, C), jnp.float32, -bound, bound)  # (in, out)
    bp = jax.random.uniform(k_b, (1, C), jnp.float32, -bound, bound)

    # Fuse q/k/v projections into a single (C, 3C) matrix (columns: q | k | v).
    wqkv = jnp.concatenate([wq, wk, wv], axis=1)

    out = multi_head_attention(x, wqkv, wp_t, bp)
    out = jax.block_until_ready(out)

    ref = reference_mha(x, wq, wk, wv, wp_t, bp)
    assert out.shape == (B, T, C)
    # Tolerance covers bf16 MXU operands (f32 accumulation) and the EUP
    # approximate reciprocal in the softmax denominator.
    err = float(jnp.max(jnp.abs(out - ref)))
    assert jnp.allclose(out, ref, atol=3e-2, rtol=3e-2), err

    print("KERNEL_OK")
</pallas_src>

<mosaic_0001>
module attributes {stable_mosaic.version = 11 : i64} {
  func.func @mha_kernel(%arg0: i32, %arg1: memref<2x8x64xf32, #tpu.memory_space<vmem>>, %arg2: memref<64x192xbf16, #tpu.memory_space<vmem>>, %arg3: memref<64x64xbf16, #tpu.memory_space<vmem>>, %arg4: memref<1x64xf32, #tpu.memory_space<vmem>>, %arg5: memref<2x8x64xf32, #tpu.memory_space<vmem>>) attributes {dimension_semantics = [#tpu.dimension_semantics<arbitrary>], iteration_bounds = array<i64: 1>, scalar_prefetch = 0 : i64, scratch_operands = 0 : i64, tpu.core_type = #tpu.core_type<tc>, window_params = [{pipeline_mode = #tpu.pipeline_mode<synchronous>, transform_indices = @transform_0, window_bounds = array<i64: 2, 8, 64>}, {pipeline_mode = #tpu.pipeline_mode<synchronous>, transform_indices = @transform_1, window_bounds = array<i64: 64, 192>}, {pipeline_mode = #tpu.pipeline_mode<synchronous>, transform_indices = @transform_2, window_bounds = array<i64: 64, 64>}, {pipeline_mode = #tpu.pipeline_mode<synchronous>, transform_indices = @transform_3, window_bounds = array<i64: 1, 64>}, {pipeline_mode = #tpu.pipeline_mode<synchronous>, transform_indices = @transform_4, window_bounds = array<i64: 2, 8, 64>}]} {
    %c0 = arith.constant 0 : index
    %c0_0 = arith.constant 0 : index
    %c0_1 = arith.constant 0 : index
    %0 = vector.load %arg1[%c0, %c0_0, %c0_1] : memref<2x8x64xf32, #tpu.memory_space<vmem>>, vector<2x8x64xf32>
    %1 = vector.shape_cast %0 : vector<2x8x64xf32> to vector<16x64xf32>
    %2 = arith.truncf %1 : vector<16x64xf32> to vector<16x64xbf16>
    %c0_2 = arith.constant 0 : index
    %c0_3 = arith.constant 0 : index
    %3 = vector.load %arg2[%c0_2, %c0_3] : memref<64x192xbf16, #tpu.memory_space<vmem>>, vector<64x192xbf16>
    %cst = arith.constant dense<0.000000e+00> : vector<16x192xf32>
    %4 = tpu.matmul %2, %3, %cst {dimension_numbers = #tpu.dot_dimension_numbers<[1], [0], [0], [1], [0, 0, 1, 1], [], []>} : vector<16x64xbf16>, vector<64x192xbf16>, vector<16x192xf32> -> vector<16x192xf32>
    %5 = vector.shape_cast %4 : vector<16x192xf32> to vector<2x8x192xf32>
    %6 = tpu.iota {dimensions = array<i32: 0>} : vector<8x8xi32>
    %7 = tpu.iota {dimensions = array<i32: 1>} : vector<8x8xi32>
    %8 = arith.cmpi sle, %7, %6 : vector<8x8xi32>
    %cst_4 = arith.constant 0.000000e+00 : f32
    %cst_5 = arith.constant -1.000000e+30 : f32
    %9 = vector.broadcast %cst_4 : f32 to vector<8x8xf32>
    %10 = vector.broadcast %cst_5 : f32 to vector<8x8xf32>
    %11 = arith.select %8, %9, %10 : vector<8x8xi1>, vector<8x8xf32>
    %12 = vector.shape_cast %11 : vector<8x8xf32> to vector<1x8x8xf32>
    %c0_6 = arith.constant 0 : index
    %c0_7 = arith.constant 0 : index
    %13 = vector.load %arg3[%c0_6, %c0_7] : memref<64x64xbf16, #tpu.memory_space<vmem>>, vector<64x64xbf16>
    %cst_8 = arith.constant 0.000000e+00 : f32
    %14 = vector.broadcast %cst_8 : f32 to vector<16x64xf32>
    %15 = vector.extract_strided_slice %5 {offsets = [0, 0, 0], sizes = [2, 8, 16], strides = [1, 1, 1]} : vector<2x8x192xf32> to vector<2x8x16xf32>
    %16 = arith.truncf %15 : vector<2x8x16xf32> to vector<2x8x16xbf16>
    %17 = vector.extract_strided_slice %5 {offsets = [0, 0, 64], sizes = [2, 8, 16], strides = [1, 1, 1]} : vector<2x8x192xf32> to vector<2x8x16xf32>
    %18 = arith.truncf %17 : vector<2x8x16xf32> to vector<2x8x16xbf16>
    %19 = vector.extract_strided_slice %5 {offsets = [0, 0, 128], sizes = [2, 8, 16], strides = [1, 1, 1]} : vector<2x8x192xf32> to vector<2x8x16xf32>
    %20 = arith.truncf %19 : vector<2x8x16xf32> to vector<2x8x16xbf16>
    "tpu.trace_start"() <{level = 10 : i32, message = "btd,bsd->bts"}> : () -> ()
    %cst_9 = arith.constant dense<0.000000e+00> : vector<2x8x8xf32>
    %21 = tpu.matmul %16, %18, %cst_9 {dimension_numbers = #tpu.dot_dimension_numbers<[2], [2], [1], [1], [0, 0, 0, 1, 1, 1], [0], [0]>} : vector<2x8x16xbf16>, vector<2x8x16xbf16>, vector<2x8x8xf32> -> vector<2x8x8xf32>
    "tpu.trace_stop"() : () -> ()
    %cst_10 = arith.constant 1.250000e-01 : f32
    %22 = vector.broadcast %cst_10 : f32 to vector<2x8x8xf32>
    %23 = arith.mulf %21, %22 : vector<2x8x8xf32>
    %24 = vector.broadcast %12 : vector<1x8x8xf32> to vector<2x8x8xf32>
    %25 = arith.addf %23, %24 : vector<2x8x8xf32>
    %cst_11 = arith.constant dense<0xFF800000> : vector<2x8xf32>
    %26 = vector.multi_reduction <maximumf>, %25, %cst_11 [2] : vector<2x8x8xf32> to vector<2x8xf32>
    %27 = vector.shape_cast %26 : vector<2x8xf32> to vector<2x8x1xf32>
    %28 = vector.broadcast %27 : vector<2x8x1xf32> to vector<2x8x8xf32>
    %29 = arith.subf %25, %28 : vector<2x8x8xf32>
    %30 = math.exp %29 : vector<2x8x8xf32>
    %cst_12 = arith.constant dense<0.000000e+00> : vector<2x8xf32>
    %31 = vector.multi_reduction <add>, %30, %cst_12 [2] : vector<2x8x8xf32> to vector<2x8xf32>
    %32 = vector.shape_cast %31 : vector<2x8xf32> to vector<2x8x1xf32>
    %33 = tpu.reciprocal %32 {approx = true} : vector<2x8x1xf32> -> vector<2x8x1xf32>
    %34 = vector.broadcast %33 : vector<2x8x1xf32> to vector<2x8x8xf32>
    %35 = arith.mulf %30, %34 : vector<2x8x8xf32>
    %36 = arith.truncf %35 : vector<2x8x8xf32> to vector<2x8x8xbf16>
    "tpu.trace_start"() <{level = 10 : i32, message = "bts,bsd->btd"}> : () -> ()
    %cst_13 = arith.constant dense<0.000000e+00> : vector<2x8x16xf32>
    %37 = tpu.matmul %36, %20, %cst_13 {dimension_numbers = #tpu.dot_dimension_numbers<[2], [1], [1], [2], [0, 0, 0, 1, 1, 2], [0], [0]>} : vector<2x8x8xbf16>, vector<2x8x16xbf16>, vector<2x8x16xf32> -> vector<2x8x16xf32>
    "tpu.trace_stop"() : () -> ()
    %38 = vector.shape_cast %37 : vector<2x8x16xf32> to vector<16x16xf32>
    %39 = arith.truncf %38 : vector<16x16xf32> to vector<16x16xbf16>
    %40 = vector.extract_strided_slice %13 {offsets = [0, 0], sizes = [16, 64], strides = [1, 1]} : vector<64x64xbf16> to vector<16x64xbf16>
    %cst_14 = arith.constant dense<0.000000e+00> : vector<16x64xf32>
    %41 = tpu.matmul %39, %40, %cst_14 {dimension_numbers = #tpu.dot_dimension_numbers<[1], [0], [0], [1], [0, 0, 1, 1], [], []>} : vector<16x16xbf16>, vector<16x64xbf16>, vector<16x64xf32> -> vector<16x64xf32>
    %42 = arith.addf %14, %41 : vector<16x64xf32>
    %43 = vector.extract_strided_slice %5 {offsets = [0, 0, 16], sizes = [2, 8, 16], strides = [1, 1, 1]} : vector<2x8x192xf32> to vector<2x8x16xf32>
    %44 = arith.truncf %43 : vector<2x8x16xf32> to vector<2x8x16xbf16>
    %45 = vector.extract_strided_slice %5 {offsets = [0, 0, 80], sizes = [2, 8, 16], strides = [1, 1, 1]} : vector<2x8x192xf32> to vector<2x8x16xf32>
    %46 = arith.truncf %45 : vector<2x8x16xf32> to vector<2x8x16xbf16>
    %47 = vector.extract_strided_slice %5 {offsets = [0, 0, 144], sizes = [2, 8, 16], strides = [1, 1, 1]} : vector<2x8x192xf32> to vector<2x8x16xf32>
    %48 = arith.truncf %47 : vector<2x8x16xf32> to vector<2x8x16xbf16>
    "tpu.trace_start"() <{level = 10 : i32, message = "btd,bsd->bts"}> : () -> ()
    %cst_15 = arith.constant dense<0.000000e+00> : vector<2x8x8xf32>
    %49 = tpu.matmul %44, %46, %cst_15 {dimension_numbers = #tpu.dot_dimension_numbers<[2], [2], [1], [1], [0, 0, 0, 1, 1, 1], [0], [0]>} : vector<2x8x16xbf16>, vector<2x8x16xbf16>, vector<2x8x8xf32> -> vector<2x8x8xf32>
    "tpu.trace_stop"() : () -> ()
    %cst_16 = arith.constant 1.250000e-01 : f32
    %50 = vector.broadcast %cst_16 : f32 to vector<2x8x8xf32>
    %51 = arith.mulf %49, %50 : vector<2x8x8xf32>
    %52 = vector.broadcast %12 : vector<1x8x8xf32> to vector<2x8x8xf32>
    %53 = arith.addf %51, %52 : vector<2x8x8xf32>
    %cst_17 = arith.constant dense<0xFF800000> : vector<2x8xf32>
    %54 = vector.multi_reduction <maximumf>, %53, %cst_17 [2] : vector<2x8x8xf32> to vector<2x8xf32>
    %55 = vector.shape_cast %54 : vector<2x8xf32> to vector<2x8x1xf32>
    %56 = vector.broadcast %55 : vector<2x8x1xf32> to vector<2x8x8xf32>
    %57 = arith.subf %53, %56 : vector<2x8x8xf32>
    %58 = math.exp %57 : vector<2x8x8xf32>
    %cst_18 = arith.constant dense<0.000000e+00> : vector<2x8xf32>
    %59 = vector.multi_reduction <add>, %58, %cst_18 [2] : vector<2x8x8xf32> to vector<2x8xf32>
    %60 = vector.shape_cast %59 : vector<2x8xf32> to vector<2x8x1xf32>
    %61 = tpu.reciprocal %60 {approx = true} : vector<2x8x1xf32> -> vector<2x8x1xf32>
    %62 = vector.broadcast %61 : vector<2x8x1xf32> to vector<2x8x8xf32>
    %63 = arith.mulf %58, %62 : vector<2x8x8xf32>
    %64 = arith.truncf %63 : vector<2x8x8xf32> to vector<2x8x8xbf16>
    "tpu.trace_start"() <{level = 10 : i32, message = "bts,bsd->btd"}> : () -> ()
    %cst_19 = arith.constant dense<0.000000e+00> : vector<2x8x16xf32>
    %65 = tpu.matmul %64, %48, %cst_19 {dimension_numbers = #tpu.dot_dimension_numbers<[2], [1], [1], [2], [0, 0, 0, 1, 1, 2], [0], [0]>} : vector<2x8x8xbf16>, vector<2x8x16xbf16>, vector<2x8x16xf32> -> vector<2x8x16xf32>
    "tpu.trace_stop"() : () -> ()
    %66 = vector.shape_cast %65 : vector<2x8x16xf32> to vector<16x16xf32>
    %67 = arith.truncf %66 : vector<16x16xf32> to vector<16x16xbf16>
    %68 = vector.extract_strided_slice %13 {offsets = [16, 0], sizes = [16, 64], strides = [1, 1]} : vector<64x64xbf16> to vector<16x64xbf16>
    %cst_20 = arith.constant dense<0.000000e+00> : vector<16x64xf32>
    %69 = tpu.matmul %67, %68, %cst_20 {dimension_numbers = #tpu.dot_dimension_numbers<[1], [0], [0], [1], [0, 0, 1, 1], [], []>} : vector<16x16xbf16>, vector<16x64xbf16>, vector<16x64xf32> -> vector<16x64xf32>
    %70 = arith.addf %42, %69 : vector<16x64xf32>
    %71 = vector.extract_strided_slice %5 {offsets = [0, 0, 32], sizes = [2, 8, 16], strides = [1, 1, 1]} : vector<2x8x192xf32> to vector<2x8x16xf32>
    %72 = arith.truncf %71 : vector<2x8x16xf32> to vector<2x8x16xbf16>
    %73 = vector.extract_strided_slice %5 {offsets = [0, 0, 96], sizes = [2, 8, 16], strides = [1, 1, 1]} : vector<2x8x192xf32> to vector<2x8x16xf32>
    %74 = arith.truncf %73 : vector<2x8x16xf32> to vector<2x8x16xbf16>
    %75 = vector.extract_strided_slice %5 {offsets = [0, 0, 160], sizes = [2, 8, 16], strides = [1, 1, 1]} : vector<2x8x192xf32> to vector<2x8x16xf32>
    %76 = arith.truncf %75 : vector<2x8x16xf32> to vector<2x8x16xbf16>
    "tpu.trace_start"() <{level = 10 : i32, message = "btd,bsd->bts"}> : () -> ()
    %cst_21 = arith.constant dense<0.000000e+00> : vector<2x8x8xf32>
    %77 = tpu.matmul %72, %74, %cst_21 {dimension_numbers = #tpu.dot_dimension_numbers<[2], [2], [1], [1], [0, 0, 0, 1, 1, 1], [0], [0]>} : vector<2x8x16xbf16>, vector<2x8x16xbf16>, vector<2x8x8xf32> -> vector<2x8x8xf32>
    "tpu.trace_stop"() : () -> ()
    %cst_22 = arith.constant 1.250000e-01 : f32
    %78 = vector.broadcast %cst_22 : f32 to vector<2x8x8xf32>
    %79 = arith.mulf %77, %78 : vector<2x8x8xf32>
    %80 = vector.broadcast %12 : vector<1x8x8xf32> to vector<2x8x8xf32>
    %81 = arith.addf %79, %80 : vector<2x8x8xf32>
    %cst_23 = arith.constant dense<0xFF800000> : vector<2x8xf32>
    %82 = vector.multi_reduction <maximumf>, %81, %cst_23 [2] : vector<2x8x8xf32> to vector<2x8xf32>
    %83 = vector.shape_cast %82 : vector<2x8xf32> to vector<2x8x1xf32>
    %84 = vector.broadcast %83 : vector<2x8x1xf32> to vector<2x8x8xf32>
    %85 = arith.subf %81, %84 : vector<2x8x8xf32>
    %86 = math.exp %85 : vector<2x8x8xf32>
    %cst_24 = arith.constant dense<0.000000e+00> : vector<2x8xf32>
    %87 = vector.multi_reduction <add>, %86, %cst_24 [2] : vector<2x8x8xf32> to vector<2x8xf32>
    %88 = vector.shape_cast %87 : vector<2x8xf32> to vector<2x8x1xf32>
    %89 = tpu.reciprocal %88 {approx = true} : vector<2x8x1xf32> -> vector<2x8x1xf32>
    %90 = vector.broadcast %89 : vector<2x8x1xf32> to vector<2x8x8xf32>
    %91 = arith.mulf %86, %90 : vector<2x8x8xf32>
    %92 = arith.truncf %91 : vector<2x8x8xf32> to vector<2x8x8xbf16>
    "tpu.trace_start"() <{level = 10 : i32, message = "bts,bsd->btd"}> : () -> ()
    %cst_25 = arith.constant dense<0.000000e+00> : vector<2x8x16xf32>
    %93 = tpu.matmul %92, %76, %cst_25 {dimension_numbers = #tpu.dot_dimension_numbers<[2], [1], [1], [2], [0, 0, 0, 1, 1, 2], [0], [0]>} : vector<2x8x8xbf16>, vector<2x8x16xbf16>, vector<2x8x16xf32> -> vector<2x8x16xf32>
    "tpu.trace_stop"() : () -> ()
    %94 = vector.shape_cast %93 : vector<2x8x16xf32> to vector<16x16xf32>
    %95 = arith.truncf %94 : vector<16x16xf32> to vector<16x16xbf16>
    %96 = vector.extract_strided_slice %13 {offsets = [32, 0], sizes = [16, 64], strides = [1, 1]} : vector<64x64xbf16> to vector<16x64xbf16>
    %cst_26 = arith.constant dense<0.000000e+00> : vector<16x64xf32>
    %97 = tpu.matmul %95, %96, %cst_26 {dimension_numbers = #tpu.dot_dimension_numbers<[1], [0], [0], [1], [0, 0, 1, 1], [], []>} : vector<16x16xbf16>, vector<16x64xbf16>, vector<16x64xf32> -> vector<16x64xf32>
    %98 = arith.addf %70, %97 : vector<16x64xf32>
    %99 = vector.extract_strided_slice %5 {offsets = [0, 0, 48], sizes = [2, 8, 16], strides = [1, 1, 1]} : vector<2x8x192xf32> to vector<2x8x16xf32>
    %100 = arith.truncf %99 : vector<2x8x16xf32> to vector<2x8x16xbf16>
    %101 = vector.extract_strided_slice %5 {offsets = [0, 0, 112], sizes = [2, 8, 16], strides = [1, 1, 1]} : vector<2x8x192xf32> to vector<2x8x16xf32>
    %102 = arith.truncf %101 : vector<2x8x16xf32> to vector<2x8x16xbf16>
    %103 = vector.extract_strided_slice %5 {offsets = [0, 0, 176], sizes = [2, 8, 16], strides = [1, 1, 1]} : vector<2x8x192xf32> to vector<2x8x16xf32>
    %104 = arith.truncf %103 : vector<2x8x16xf32> to vector<2x8x16xbf16>
    "tpu.trace_start"() <{level = 10 : i32, message = "btd,bsd->bts"}> : () -> ()
    %cst_27 = arith.constant dense<0.000000e+00> : vector<2x8x8xf32>
    %105 = tpu.matmul %100, %102, %cst_27 {dimension_numbers = #tpu.dot_dimension_numbers<[2], [2], [1], [1], [0, 0, 0, 1, 1, 1], [0], [0]>} : vector<2x8x16xbf16>, vector<2x8x16xbf16>, vector<2x8x8xf32> -> vector<2x8x8xf32>
    "tpu.trace_stop"() : () -> ()
    %cst_28 = arith.constant 1.250000e-01 : f32
    %106 = vector.broadcast %cst_28 : f32 to vector<2x8x8xf32>
    %107 = arith.mulf %105, %106 : vector<2x8x8xf32>
    %108 = vector.broadcast %12 : vector<1x8x8xf32> to vector<2x8x8xf32>
    %109 = arith.addf %107, %108 : vector<2x8x8xf32>
    %cst_29 = arith.constant dense<0xFF800000> : vector<2x8xf32>
    %110 = vector.multi_reduction <maximumf>, %109, %cst_29 [2] : vector<2x8x8xf32> to vector<2x8xf32>
    %111 = vector.shape_cast %110 : vector<2x8xf32> to vector<2x8x1xf32>
    %112 = vector.broadcast %111 : vector<2x8x1xf32> to vector<2x8x8xf32>
    %113 = arith.subf %109, %112 : vector<2x8x8xf32>
    %114 = math.exp %113 : vector<2x8x8xf32>
    %cst_30 = arith.constant dense<0.000000e+00> : vector<2x8xf32>
    %115 = vector.multi_reduction <add>, %114, %cst_30 [2] : vector<2x8x8xf32> to vector<2x8xf32>
    %116 = vector.shape_cast %115 : vector<2x8xf32> to vector<2x8x1xf32>
    %117 = tpu.reciprocal %116 {approx = true} : vector<2x8x1xf32> -> vector<2x8x1xf32>
    %118 = vector.broadcast %117 : vector<2x8x1xf32> to vector<2x8x8xf32>
    %119 = arith.mulf %114, %118 : vector<2x8x8xf32>
    %120 = arith.truncf %119 : vector<2x8x8xf32> to vector<2x8x8xbf16>
    "tpu.trace_start"() <{level = 10 : i32, message = "bts,bsd->btd"}> : () -> ()
    %cst_31 = arith.constant dense<0.000000e+00> : vector<2x8x16xf32>
    %121 = tpu.matmul %120, %104, %cst_31 {dimension_numbers = #tpu.dot_dimension_numbers<[2], [1], [1], [2], [0, 0, 0, 1, 1, 2], [0], [0]>} : vector<2x8x8xbf16>, vector<2x8x16xbf16>, vector<2x8x16xf32> -> vector<2x8x16xf32>
    "tpu.trace_stop"() : () -> ()
    %122 = vector.shape_cast %121 : vector<2x8x16xf32> to vector<16x16xf32>
    %123 = arith.truncf %122 : vector<16x16xf32> to vector<16x16xbf16>
    %124 = vector.extract_strided_slice %13 {offsets = [48, 0], sizes = [16, 64], strides = [1, 1]} : vector<64x64xbf16> to vector<16x64xbf16>
    %cst_32 = arith.constant dense<0.000000e+00> : vector<16x64xf32>
    %125 = tpu.matmul %123, %124, %cst_32 {dimension_numbers = #tpu.dot_dimension_numbers<[1], [0], [0], [1], [0, 0, 1, 1], [], []>} : vector<16x16xbf16>, vector<16x64xbf16>, vector<16x64xf32> -> vector<16x64xf32>
    %126 = arith.addf %98, %125 : vector<16x64xf32>
    %c0_33 = arith.constant 0 : index
    %c0_34 = arith.constant 0 : index
    %127 = vector.load %arg4[%c0_33, %c0_34] : memref<1x64xf32, #tpu.memory_space<vmem>>, vector<1x64xf32>
    %128 = vector.broadcast %127 : vector<1x64xf32> to vector<16x64xf32>
    %129 = arith.addf %126, %128 : vector<16x64xf32>
    %130 = vector.shape_cast %129 : vector<16x64xf32> to vector<2x8x64xf32>
    %c0_35 = arith.constant 0 : index
    %c0_36 = arith.constant 0 : index
    %c0_37 = arith.constant 0 : index
    %131 = vector.load %arg5[%c0_35, %c0_36, %c0_37] : memref<2x8x64xf32, #tpu.memory_space<vmem>>, vector<2x8x64xf32>
    tpu.vector_store %arg5[%c0_35, %c0_36, %c0_37], %130 {strides = array<i32>} : memref<2x8x64xf32, #tpu.memory_space<vmem>>, vector<2x8x64xf32>,
    return
  }
  func.func @transform_0(%arg0: i32) -> (i32, i32, i32) {
    %c0_i32 = arith.constant 0 : i32
    %c0_i32_0 = arith.constant 0 : i32
    %c0_i32_1 = arith.constant 0 : i32
    %c0_i32_2 = arith.constant 0 : i32
    return %c0_i32, %c0_i32_0, %c0_i32_1 : i32, i32, i32
  }
  func.func @transform_1(%arg0: i32) -> (i32, i32) {
    %c0_i32 = arith.constant 0 : i32
    %c0_i32_0 = arith.constant 0 : i32
    %c0_i32_1 = arith.constant 0 : i32
    return %c0_i32, %c0_i32_0 : i32, i32
  }
  func.func @transform_2(%arg0: i32) -> (i32, i32) {
    %c0_i32 = arith.constant 0 : i32
    %c0_i32_0 = arith.constant 0 : i32
    %c0_i32_1 = arith.constant 0 : i32
    return %c0_i32, %c0_i32_0 : i32, i32
  }
  func.func @transform_3(%arg0: i32) -> (i32, i32) {
    %c0_i32 = arith.constant 0 : i32
    %c0_i32_0 = arith.constant 0 : i32
    %c0_i32_1 = arith.constant 0 : i32
    return %c0_i32, %c0_i32_0 : i32, i32
  }
  func.func @transform_4(%arg0: i32) -> (i32, i32, i32) {
    %c0_i32 = arith.constant 0 : i32
    %c0_i32_0 = arith.constant 0 : i32
    %c0_i32_1 = arith.constant 0 : i32
    %c0_i32_2 = arith.constant 0 : i32
    return %c0_i32, %c0_i32_0, %c0_i32_1 : i32, i32, i32
  }
}

</mosaic_0001>

<bundles_post_ra>
// kernel: tpu_custom_call.1
= control target key start
LH: loop header
LB: loop body
LE: loop exit
PB: predicated region body
PF: predicated region fallthrough
CT: control target
= control target key end

     0   :  { %9 = vsyncpa [#allocation3], 0  ;;  %s1965_s0 = inlined_call_operand.hbm [shape: f32[2,8,64], index: 0, kind: input, shape index: {}]   ;;  %s1966_s1 = inlined_call_operand.hbm [shape: bf16[64,192], index: 1, kind: input, shape index: {}]   ;;  %s1967_s2 = inlined_call_operand.hbm [shape: bf16[64,64], index: 2, kind: input, shape index: {}]   ;;  %s1968_s3 = inlined_call_operand.vmem [shape: f32[1,64], index: 3, kind: input, shape index: {}]   ;;  %s1969_s4 = inlined_call_operand.hbm [shape: f32[2,8,64], index: 4, kind: output, shape index: {}]  }
   0x1   :  { %10 = vsyncpa [#allocation6], 0 }
   0x2   :  { %11 = vsyncpa [#allocation4], 0  ;;  %s1662_s15 = smov [#allocation5]   ;;  %s1663_s17 = smov [#allocation2]  }
   0x3   :  { %s29_s16 = sshll.u32 %s1662_s15, 4  ;;  %s17_s18 = sshll.u32 %s1663_s17, 4  ;;  %s30_s16 = int_to_ptr.vmem [resolvable:$true] %s29_s16  ;;  %s1705_s18 = int_to_ptr.vmem [resolvable:$true] %s17_s18 }
   0x4   :  { %s1568_s21 = scalar_lea.hbm %s1966_s1, 1024 }
   0x5   :  { %p1569_p0 = scmp.ne.s32.totalorder %s1966_s1, %s1568_s21  ;;  %p1572_p1 = scmp.lt.u32.totalorder %s1568_s21, %s1966_s1 }
   0x7   :  { %p1574_p2 = pnand %p1572_p1, %p1569_p0 }
   0x9   :  { %1577 = shalt.err (!%p1574_p2)
}
   0xa   :  { %s1578_s26 = scalar_lea.vmem %s30_s16, 1024  ;;  %p1583_p4 = scmp.lt.s32.totalorder %s30_s16, %s30_s16 }
   0xb   :  { %p1579_p3 = scmp.ne.s32.totalorder %s30_s16, %s1578_s26  ;;  %p1584_p5 = scmp.lt.s32.totalorder %s1578_s26, %s1578_s26 }
   0xd   :  { %p1585_p6 = por %p1584_p5, %p1583_p4 }
   0xf   :  { %p1586_p7 = pnand %p1585_p6, %p1579_p3 }
  0x11   :  { %1589 = shalt.err (!%p1586_p7)
}
  0x12   :  { %s1664_s27 = smov 128   ;;  %s1665_s28 = smov 8  }
  0x13   :  { %35 = dma.hbm_to_vmem [thread:$0]  %s1966_s1, 1024, %s30_s16, [#allocation6], %s1664_s27, %s1664_s27, %s1665_s28  }
  0x14   :  { %s1590_s7 = scalar_lea.hbm %s1965_s0, 256 }
  0x15   :  { %p1591_p8 = scmp.ne.s32.totalorder %s1965_s0, %s1590_s7  ;;  %p1594_p9 = scmp.lt.u32.totalorder %s1590_s7, %s1965_s0 }
  0x17   :  { %p1596_p10 = pnand %p1594_p9, %p1591_p8 }
  0x19   :  { %1599 = shalt.err (!%p1596_p10)
}
  0x1a   :  { %s1600_s12 = scalar_lea.vmem %s1705_s18, 256  ;;  %p1605_p12 = scmp.lt.s32.totalorder %s1705_s18, %s1705_s18 }
  0x1b   :  { %p1601_p11 = scmp.ne.s32.totalorder %s1705_s18, %s1600_s12  ;;  %p1606_p13 = scmp.lt.s32.totalorder %s1600_s12, %s1600_s12 }
  0x1d   :  { %p1607_p0 = por %p1606_p13, %p1605_p12 }
  0x1f   :  { %p1608_p1 = pnand %p1607_p0, %p1601_p11 }
  0x21   :  { %1611 = shalt.err (!%p1608_p1)
}
  0x22   :  { %23 = dma.hbm_to_vmem [thread:$0]  %s1965_s0, 256, %s1705_s18, [#allocation3], %s1664_s27, %s1664_s27, %s1665_s28  }
  0x23   :  { %s1666_s14 = smov [#allocation7]   ;;  %s1612_s19 = scalar_lea.hbm %s1967_s2, 512 }
  0x24   :  { %s41_s15 = sshll.u32 %s1666_s14, 4  ;;  %p1613_p2 = scmp.ne.s32.totalorder %s1967_s2, %s1612_s19  ;;  %s42_s15 = int_to_ptr.vmem [resolvable:$true] %s41_s15 }
  0x25   :  { %p1616_p3 = scmp.lt.u32.totalorder %s1612_s19, %s1967_s2 }
  0x27   :  { %p1618_p4 = pnand %p1616_p3, %p1613_p2 }
  0x29   :  { %1621 = shalt.err (!%p1618_p4)
}
  0x2a   :  { %s1622_s24 = scalar_lea.vmem %s42_s15, 512  ;;  %p1627_p6 = scmp.lt.s32.totalorder %s42_s15, %s42_s15 }
  0x2b   :  { %p1623_p5 = scmp.ne.s32.totalorder %s42_s15, %s1622_s24  ;;  %p1628_p7 = scmp.lt.s32.totalorder %s1622_s24, %s1622_s24 }
  0x2d   :  { %p1629_p8 = por %p1628_p7, %p1627_p6 }
  0x2f   :  { %p1630_p9 = pnand %p1629_p8, %p1623_p5 }
  0x31   :  { %1633 = shalt.err (!%p1630_p9)
}
  0x32   :  { %s1667_s0 = smov 64   ;;  %s1668_s18 = smov 4  }
  0x33   :  { %47 = dma.hbm_to_vmem [thread:$0]  %s1967_s2, 512, %s42_s15, [#allocation6], %s1667_s0, %s1667_s0, %s1668_s18  }
  0x34   :  { %1656 = dma.done.wait [#allocation3], 256  }
  0x35   :  { %1657 = vsyncadd [#allocation3], 4294967040 }
  0x36   :  { %1658 = dma.done.wait [#allocation6], 1536  }
  0x37   :  { %1659 = vsyncadd [#allocation6], 4294965760  ;;  %v1669_v0 = vmov 0   ;;  %v1520_v1 = vld [vmem:[#allocation5 + $0x4] ss:$8 sps:$4 sm:$0xff]   ;;  %v60_v9 = vld [vmem:[#allocation2] sm:$0xff]  ;;  %v158_v27 = vlaneseq }
  0x38   :  { %147 = vmatprep.mubr.bf16.mxu0 %v1669_v0  ;;  %v1522_v2 = vld [vmem:[#allocation5] ss:$8 sps:$4 sm:$0xff]   ;;  %115 = vmatprep.subr.bf16.mxu0 %v1520_v1  ;;  %v1523_v3 = vld [vmem:[#allocation5 + $0x14] ss:$8 sps:$4 sm:$0xff]   ;;  %v1525_v4 = vld [vmem:[#allocation5 + $0x10] ss:$8 sps:$4 sm:$0xff]  }
  0x39   :  { %116 = vmatpush1.bf16.msra.mxu0 %v1522_v2  ;;  %v1526_v5 = vld [vmem:[#allocation5 + $0x24] ss:$8 sps:$4 sm:$0xff]   ;;  %v1528_v6 = vld [vmem:[#allocation5 + $0x20] ss:$8 sps:$4 sm:$0xff]   ;;  %v1529_v7 = vld [vmem:[#allocation5 + $0x34] ss:$8 sps:$4 sm:$0xff]  }
  0x3a   :  { %117 = vmatprep.subr.bf16.mxu0 %v1523_v3  ;;  %v1531_v8 = vld [vmem:[#allocation5 + $0x30] ss:$8 sps:$4 sm:$0xff]   ;;  %vm111_vm0 = vcmask 523264   ;;  %v1670_v12 = vmov 0.0   ;;  %vm1671_vm1 = vmmov 0   ;;  %vm307_vm2 = vcmask 1043456  }
  0x3b   :  { %v61_v10 = vld [vmem:[#allocation2 + $0x8] sm:$0xff]  ;;  %1382 = vmatprep.subr.bf16.mxu1 %v1670_v12  ;;  %1384 = vmatprep.mubr.msk.bf16.mxu1 %vm1671_vm1, %v1670_v12  ;;  %vm179_vm3 = vcmask 130048   ;;  %v159_v28 = vshrl.u32 %v158_v27, 7  ;;  %v161_v29 = vand.u32 127, %v158_v27  ;;  %v1672_v31 = vmov -1e+30  }
  0x3c   :  { %v62_v11 = vpack.c.bf16 %v61_v10, %v60_v9  ;;  %vm279_vm5 = vcmask 64512   ;;  %s1673_s2 = smov 48   ;;  %s1674_s29 = smov 112  }
  0x3d   :  { %118 = vmatpush1.bf16.msra.mxu0 %v1525_v4  ;;  %vm162_vm4 = vcmp.le.s32.totalorder %v161_v29, %v159_v28  ;;  %s1675_s30 = smov 32   ;;  %s1676_s5 = smov 96  }
  0x3e   :  { %119 = vmatprep.subr.bf16.mxu0 %v1526_v5  ;;  %v1793_v32 = vsel %vm162_vm4, 0.0, %v1672_v31  ;;  %s1677_s6 = smov 16   ;;  %s1678_s7 = smov 80  }
  0x3f   :  { %s1679_s10 = smov [#allocation8]  }
  0x40   :  { %s1295_s11 = sshll.u32 %s1679_s10, 4  ;;  %s1296_s11 = int_to_ptr.vmem [resolvable:$true] %s1295_s11 }
  0x41   :  { %120 = vmatpush1.bf16.msra.mxu0 %v1528_v6  ;;  %s1634_s12 = scalar_lea.vmem %s1296_s11, 256  ;;  %p1639_p11 = scmp.lt.s32.totalorder %s1296_s11, %s1296_s11 }
  0x42   :  { %121 = vmatprep.subr.bf16.mxu0 %v1529_v7  ;;  %p1635_p10 = scmp.ne.s32.totalorder %s1296_s11, %s1634_s12  ;;  %p1640_p12 = scmp.lt.s32.totalorder %s1634_s12, %s1634_s12 }
  0x44   :  { %p1641_p13 = por %p1640_p12, %p1639_p11 }
  0x45   :  { %122 = vmatpush1.bf16.msra.mxu0 %v1531_v8 }
  0x46   :  { %1394 = vmatprep.subr.bf16.mxu0 %v1670_v12  ;;  %p1642_p0 = pnand %p1641_p13, %p1635_p10 }
  0x48   :  { %1316 = vmatmul.mubr.msk.bf16.vlgmr.msra.gmra.mrb[0].mxu0 %vm111_vm0, %v62_v11 }
  0x49   :  { %1396 = vmatprep.mubr.msk.bf16.mxu0 %vm1671_vm1, %v1670_v12 }
 0x11b   :  { %v149_v13 = vpop.f32.mrb[0].mxu0 }
 0x11c   :  { %v1763_v14 = vpack.c.bf16 %v149_v13, %v149_v13  ;;  %v151_v15 = vpop.f32.mrb[1].mxu0 }
 0x11d   :  { %v1765_v16 = vpack.c.bf16 %v151_v15, %v151_v15  ;;  %v153_v17 = vpop.f32.mrb[2].mxu0 }
 0x11e   :  { %177 = vrot.lane.b32.xlu0 %v1763_v14, %s1667_s0  ;;  %v155_v18 = vpop.f32.mrb[3].mxu0  ;;  %v1771_v20 = vpack.c.bf16 %v153_v17, %v153_v17 }
 0x11f   :  { %v309_v19 = vsel %vm307_vm2, %v1765_v16, 0  ;;  %v1784_v25 = vpack.c.bf16 %v155_v18, %v155_v18 }
 0x120   :  { %1395 = vmatpush3.bf16.msra.mxu0 %v309_v19 }
 0x121   :  { %1406 = vmatprep.subr.bf16.mxu0 %v1670_v12  ;;  %v355_v26 = vsel %vm307_vm2, %v1784_v25, 0 }
 0x122   :  { %227 = vrot.lane.b32.xlu0 %v1771_v20, %s1667_s0 }
 0x190   :  { %v178_v21 = vpop.permute.xlu0 %177 }
 0x191   :  { %v184_v22 = vsel %vm179_vm3, %v178_v21, 0 }
 0x192   :  { %1383 = vmatpush3.bf16.xpose.msra.mxu1 %v184_v22 }
 0x193   :  { %1388 = vmatprep.subr.bf16.mxu1 %v1670_v12 }
 0x194   :  { %v228_v23 = vpop.permute.xlu0 %227 }
 0x195   :  { %v233_v24 = vsel %vm179_vm3, %v228_v23, 0 }
 0x199   :  { %1385 = vmatmul.mubr.msk.bf16.vlgmr.msra.gmra.mrb[0].mxu1 %vm179_vm3, %v1763_v14 }
 0x19a   :  { %1389 = vmatpush3.bf16.xpose.msra.mxu1 %v233_v24  ;;  %1390 = vmatprep.mubr.msk.bf16.mxu1 %vm1671_vm1, %v1670_v12 }
 0x19b   :  { %1400 = vmatprep.subr.bf16.mxu1 %v1670_v12 }
 0x1a1   :  { %1391 = vmatmul.mubr.msk.bf16.vlgmr.msra.gmra.mrb[4].mxu1 %vm179_vm3, %v1771_v20 }
 0x1a2   :  { %1401 = vmatpush3.bf16.msra.mxu1 %v355_v26  ;;  %1402 = vmatprep.mubr.msk.bf16.mxu1 %vm1671_vm1, %v1670_v12 }
 0x1a3   :  { %1412 = vmatprep.subr.bf16.mxu1 %v1670_v12 }
 0x26c   :  { %v220_v30 = vpop.f32.mrb[0].mxu1 }
 0x26d   :  { %v275_v33 = vmul.f32 0.125, %v220_v30  ;;  %v1386_v34 = vpop.f32.mrb[1].mxu1 }
 0x26e   :  { %v223_v35 = vpop.f32.mrb[2].mxu1 }
 0x26f   :  { %v1387_v36 = vpop.f32.mrb[3].mxu1  ;;  %v277_v37 = vadd.f32 %v275_v33, %v1793_v32 }
 0x271   :  { %v280_v38 = vsel %vm279_vm5, %v277_v37, -inf }
 0x272   :  { %281 = vmax.xlane.f32.xlu1 %v280_v38 }
 0x274   :  { %v269_v39 = vpop.f32.mrb[4].mxu1 }
 0x275   :  { %v276_v40 = vmul.f32 0.125, %v269_v39  ;;  %v1392_v41 = vpop.f32.mrb[5].mxu1 }
 0x276   :  { %v272_v42 = vpop.f32.mrb[6].mxu1 }
 0x277   :  { %v1393_v43 = vpop.f32.mrb[7].mxu1  ;;  %v278_v44 = vadd.f32 %v276_v40, %v1793_v32 }
 0x279   :  { %v283_v45 = vsel %vm279_vm5, %v278_v44, -inf }
 0x27a   :  { %284 = vmax.xlane.f32.xlu1 %v283_v45 }
 0x28b   :  { %400 = vrot.lane.b32.xlu1 %v1763_v14, %s1673_s2 }
 0x28f   :  { %450 = vrot.lane.b32.xlu1 %v1771_v20, %s1673_s2 }
 0x2ff   :  { %v282_v46 = vpop.xlane.xlu1 %281 }
 0x300   :  { %v286_v47 = vsub.f32 %v277_v37, %v282_v46 }
 0x302   :  { %v288_v48 = vmul.f32 1.442695, %v286_v47 }
 0x304   :  { %1536 = vpow2.f32 %v288_v48 }
 0x307   :  { %v285_v49 = vpop.xlane.xlu1 %284 }
 0x308   :  { %v287_v50 = vsub.f32 %v278_v44, %v285_v49 }
 0x30a   :  { %v290_v51 = vmul.f32 1.442695, %v287_v50 }
 0x30b   :  { %v401_v56 = vpop.permute.xlu1 %400 }
 0x30c   :  { %1538 = vpow2.f32 %v290_v51  ;;  %v406_v63 = vsel %vm179_vm3, %v401_v56, 0  ;;  %v1532_v56 = vld [vmem:[#allocation7] sm:$0xff]  }
 0x30e   :  { %v1537_v52 = vpop.eup %1536 }
 0x30f   :  { %v292_v53 = vsel %vm279_vm5, %v1537_v52, 0.0  ;;  %v451_v58 = vpop.permute.xlu1 %450 }
 0x310   :  { %293 = vadd.xlane.f32.xlu0 %v292_v53  ;;  %v456_v4 = vsel %vm179_vm3, %v451_v58, 0 }
 0x316   :  { %v1539_v54 = vpop.eup %1538 }
 0x317   :  { %v295_v55 = vsel %vm279_vm5, %v1539_v54, 0.0 }
 0x318   :  { %296 = vadd.xlane.f32.xlu1 %v295_v55 }
 0x329   :  { %398 = vrot.lane.b32.xlu1 %v1763_v14, %s1674_s29 }
 0x32d   :  { %448 = vrot.lane.b32.xlu1 %v1771_v20, %s1674_s29 }
 0x39d   :  { %v294_v57 = vpop.xlane.xlu0 %293 }
 0x39e   :  { %1540 = vrcp.f32 %v294_v57 }
 0x3a5   :  { %v297_v59 = vpop.xlane.xlu1 %296 }
 0x3a6   :  { %1542 = vrcp.f32 %v297_v59 }
 0x3a8   :  { %v1541_v60 = vpop.eup %1540 }
 0x3a9   :  { %v300_v61 = vmul.f32 %v1541_v60, %v1537_v52  ;;  %v399_v3 = vpop.permute.xlu1 %398 }
 0x3ab   :  { %v302_v62 = vpack.c.bf16 %v300_v61, %v300_v61 }
 0x3ad   :  { %1397 = vmatmul.mubr.msk.bf16.vlgmr.msra.gmra.mrb[4].mxu0 %vm279_vm5, %v302_v62  ;;  %v449_v5 = vpop.permute.xlu1 %448 }
 0x3ae   :  { %1407 = vmatpush3.bf16.xpose.msra.mxu0 %v406_v63  ;;  %1408 = vmatprep.mubr.msk.bf16.mxu0 %vm1671_vm1, %v1670_v12  ;;  %v1533_v63 = vld [vmem:[#allocation7 + $0x8] sm:$0xff]  }
 0x3af   :  { %1418 = vmatprep.subr.bf16.mxu0 %v1670_v12 }
 0x3b0   :  { %v1543_v0 = vpop.eup %1542 }
 0x3b1   :  { %v301_v1 = vmul.f32 %v1543_v0, %v1539_v54 }
 0x3b3   :  { %v303_v2 = vpack.c.bf16 %v301_v1, %v301_v1 }
 0x3b5   :  { %1403 = vmatmul.mubr.msk.bf16.vlgmr.msra.gmra.mrb[8].mxu1 %vm279_vm5, %v303_v2  ;;  %1409 = vmatmul.mubr.msk.bf16.vlgmr.msra.gmra.mrb[8].mxu0 %vm179_vm3, %v399_v3 }
 0x3b6   :  { %1413 = vmatpush3.bf16.xpose.msra.mxu1 %v456_v4  ;;  %1414 = vmatprep.mubr.msk.bf16.mxu1 %vm1671_vm1, %v1670_v12 }
 0x3b7   :  { %1424 = vmatprep.subr.bf16.mxu1 %v1670_v12  ;;  %1420 = vmatprep.mubr.msk.bf16.mxu0 %vm1671_vm1, %v1670_v12 }
 0x3bd   :  { %1415 = vmatmul.mubr.msk.bf16.vlgmr.msra.gmra.mrb[12].mxu1 %vm179_vm3, %v449_v5 }
 0x3be   :  { %1426 = vmatprep.mubr.msk.bf16.mxu1 %vm1671_vm1, %v1670_v12 }
 0x480   :  { %v1823_v6 = vpop.f32.mrb[4].mxu0 }
 0x481   :  { %v1398_v7 = vpop.f32.mrb[5].mxu0 }
 0x482   :  { %v348_v8 = vpop.f32.mrb[6].mxu0 }
 0x483   :  { %v1399_v9 = vpop.f32.mrb[7].mxu0 }
 0x488   :  { %v1825_v10 = vpop.f32.mrb[8].mxu1  ;;  %v442_v11 = vpop.f32.mrb[8].mxu0 }
 0x489   :  { %v397_v13 = vpack.c.bf16 %v1825_v10, %v1823_v6  ;;  %v498_v15 = vmul.f32 0.125, %v442_v11  ;;  %v1404_v17 = vpop.f32.mrb[9].mxu1  ;;  %v1410_v18 = vpop.f32.mrb[9].mxu0 }
 0x48a   :  { %v394_v19 = vpop.f32.mrb[10].mxu1  ;;  %v445_v21 = vpop.f32.mrb[10].mxu0 }
 0x48b   :  { %v1405_v22 = vpop.f32.mrb[11].mxu1  ;;  %v1411_v23 = vpop.f32.mrb[11].mxu0  ;;  %v500_v24 = vadd.f32 %v498_v15, %v1793_v32 }
 0x48d   :  { %v502_v26 = vsel %vm279_vm5, %v500_v24, -inf }
 0x48e   :  { %503 = vmax.xlane.f32.xlu0 %v502_v26 }
 0x490   :  { %v492_v27 = vpop.f32.mrb[12].mxu1 }
 0x491   :  { %v499_v28 = vmul.f32 0.125, %v492_v27  ;;  %v1416_v29 = vpop.f32.mrb[13].mxu1 }
 0x492   :  { %v495_v30 = vpop.f32.mrb[14].mxu1 }
 0x493   :  { %v1417_v31 = vpop.f32.mrb[15].mxu1  ;;  %v501_v33 = vadd.f32 %v499_v28, %v1793_v32 }
 0x495   :  { %v505_v34 = vsel %vm279_vm5, %v501_v33, -inf }
 0x496   :  { %506 = vmax.xlane.f32.xlu1 %v505_v34 }
 0x4a4   :  { %527 = vrot.lane.b32.xlu0 %v1765_v16, %s1674_s29 }
 0x4a7   :  { %777 = vrot.lane.b32.xlu1 %v1771_v20, %s1675_s30 }
 0x51b   :  { %v504_v35 = vpop.xlane.xlu0 %503 }
 0x51c   :  { %v508_v36 = vsub.f32 %v500_v24, %v504_v35 }
 0x51e   :  { %v510_v37 = vmul.f32 1.442695, %v508_v36 }
 0x51f   :  { %v528_v38 = vpop.permute.xlu0 %527 }
 0x520   :  { %1544 = vpow2.f32 %v510_v37  ;;  %v533_v39 = vsel %vm307_vm2, %v528_v38, 0 }
 0x521   :  { %1419 = vmatpush3.bf16.msra.mxu0 %v533_v39 }
 0x522   :  { %1430 = vmatprep.subr.bf16.mxu0 %v1670_v12 }
 0x523   :  { %v507_v40 = vpop.xlane.xlu1 %506 }
 0x524   :  { %v509_v41 = vsub.f32 %v501_v33, %v507_v40 }
 0x526   :  { %v512_v42 = vmul.f32 1.442695, %v509_v41 }
 0x527   :  { %v778_v59 = vpop.permute.xlu1 %777 }
 0x528   :  { %1546 = vpow2.f32 %v512_v42  ;;  %v783_v60 = vsel %vm179_vm3, %v778_v59, 0 }
 0x52a   :  { %v1545_v43 = vpop.eup %1544 }
 0x52b   :  { %v514_v44 = vsel %vm279_vm5, %v1545_v43, 0.0 }
 0x52c   :  { %515 = vadd.xlane.f32.xlu0 %v514_v44 }
 0x532   :  { %v1547_v45 = vpop.eup %1546 }
 0x533   :  { %v517_v46 = vsel %vm279_vm5, %v1547_v45, 0.0 }
 0x534   :  { %518 = vadd.xlane.f32.xlu0 %v517_v46 }
 0x54a   :  { %576 = vrot.lane.b32.xlu0 %v1784_v25, %s1674_s29 }
 0x54e   :  { %727 = vrot.lane.b32.xlu0 %v1763_v14, %s1675_s30 }
 0x552   :  { %725 = vrot.lane.b32.xlu0 %v1763_v14, %s1676_s5 }
 0x556   :  { %775 = vrot.lane.b32.xlu0 %v1771_v20, %s1676_s5 }
 0x5b9   :  { %v516_v47 = vpop.xlane.xlu0 %515 }
 0x5ba   :  { %1548 = vrcp.f32 %v516_v47 }
 0x5c1   :  { %v519_v48 = vpop.xlane.xlu0 %518 }
 0x5c2   :  { %1550 = vrcp.f32 %v519_v48 }
 0x5c4   :  { %v1549_v49 = vpop.eup %1548 }
 0x5c5   :  { %v522_v50 = vmul.f32 %v1549_v49, %v1545_v43  ;;  %v577_v51 = vpop.permute.xlu0 %576 }
 0x5c6   :  { %v582_v52 = vsel %vm307_vm2, %v577_v51, 0 }
 0x5c7   :  { %1425 = vmatpush3.bf16.msra.mxu1 %v582_v52  ;;  %v524_v53 = vpack.c.bf16 %v522_v50, %v522_v50 }
 0x5c8   :  { %1436 = vmatprep.subr.bf16.mxu1 %v1670_v12 }
 0x5c9   :  { %1421 = vmatmul.mubr.msk.bf16.vlgmr.msra.gmra.mrb[12].mxu0 %vm279_vm5, %v524_v53  ;;  %v728_v58 = vpop.permute.xlu0 %727 }
 0x5ca   :  { %1432 = vmatprep.mubr.msk.bf16.mxu0 %vm1671_vm1, %v1670_v12  ;;  %1431 = vmatpush3.bf16.msra.mxu0 %v1533_v63  ;;  %v733_v8 = vsel %vm179_vm3, %v728_v58, 0  ;;  %v1534_v63 = vld [vmem:[#allocation7 + $0x10] sm:$0xff]  }
 0x5cb   :  { %1442 = vmatprep.subr.bf16.mxu0 %v1670_v12 }
 0x5cc   :  { %v1551_v54 = vpop.eup %1550 }
 0x5cd   :  { %v523_v55 = vmul.f32 %v1551_v54, %v1547_v45  ;;  %v726_v61 = vpop.permute.xlu0 %725 }
 0x5cf   :  { %v525_v57 = vpack.c.bf16 %v523_v55, %v523_v55 }
 0x5d1   :  { %1427 = vmatmul.mubr.msk.bf16.vlgmr.msra.gmra.mrb[16].mxu1 %vm279_vm5, %v525_v57  ;;  %v776_v62 = vpop.permute.xlu0 %775 }
 0x5d2   :  { %1437 = vmatpush3.bf16.msra.mxu1 %v1532_v56  ;;  %1438 = vmatprep.mubr.msk.bf16.mxu1 %vm1671_vm1, %v1670_v12 }
 0x5d3   :  { %1448 = vmatprep.subr.bf16.mxu1 %v1670_v12 }
 0x5d9   :  { %1439 = vmatmul.mubr.msk.bf16.vlgmr.msra.gmra.mrb[20].mxu1 %vm179_vm3, %v397_v13 }
 0x5da   :  { %1450 = vmatprep.mubr.msk.bf16.mxu1 %vm1671_vm1, %v1670_v12 }
 0x5db   :  { %1449 = vmatpush3.bf16.xpose.msra.mxu1 %v783_v60 }
 0x5dc   :  { %1460 = vmatprep.subr.bf16.mxu1 %v1670_v12 }
 0x5e2   :  { %1451 = vmatmul.mubr.msk.bf16.vlgmr.msra.gmra.mrb[24].mxu1 %vm179_vm3, %v776_v62 }
 0x5e3   :  { %1462 = vmatprep.mubr.msk.bf16.mxu1 %vm1671_vm1, %v1670_v12 }
 0x69c   :  { %v569_v0 = vpop.f32.mrb[12].mxu0 }
 0x69d   :  { %v1422_v1 = vpop.f32.mrb[13].mxu0 }
 0x69e   :  { %v572_v2 = vpop.f32.mrb[14].mxu0 }
 0x69f   :  { %v1423_v3 = vpop.f32.mrb[15].mxu0 }
 0x6a4   :  { %v618_v4 = vpop.f32.mrb[16].mxu1 }
 0x6a5   :  { %v624_v5 = vpack.c.bf16 %v618_v4, %v569_v0  ;;  %v1428_v6 = vpop.f32.mrb[17].mxu1 }
 0x6a6   :  { %v621_v7 = vpop.f32.mrb[18].mxu1 }
 0x6a7   :  { %v1429_v9 = vpop.f32.mrb[19].mxu1  ;;  %1433 = vmatmul.mubr.msk.bf16.vlgmr.msra.gmra.mrb[16].mxu0 %vm179_vm3, %v624_v5 }
 0x6a8   :  { %1443 = vmatpush3.bf16.xpose.msra.mxu0 %v733_v8  ;;  %1444 = vmatprep.mubr.msk.bf16.mxu0 %vm1671_vm1, %v1670_v12 }
 0x6a9   :  { %1454 = vmatprep.subr.bf16.mxu0 %v1670_v12 }
 0x6ac   :  { %v718_v10 = vpop.f32.mrb[20].mxu1 }
 0x6ad   :  { %v1440_v11 = vpop.f32.mrb[21].mxu1 }
 0x6ae   :  { %v721_v13 = vpop.f32.mrb[22].mxu1 }
 0x6af   :  { %v1441_v15 = vpop.f32.mrb[23].mxu1  ;;  %1445 = vmatmul.mubr.msk.bf16.vlgmr.msra.gmra.mrb[20].mxu0 %vm179_vm3, %v726_v61 }
 0x6b0   :  { %1456 = vmatprep.mubr.msk.bf16.mxu0 %vm1671_vm1, %v1670_v12 }
 0x6b5   :  { %v819_v17 = vpop.f32.mrb[24].mxu1 }
 0x6b6   :  { %v826_v18 = vmul.f32 0.125, %v819_v17  ;;  %v1452_v19 = vpop.f32.mrb[25].mxu1 }
 0x6b7   :  { %v822_v21 = vpop.f32.mrb[26].mxu1 }
 0x6b8   :  { %v1453_v22 = vpop.f32.mrb[27].mxu1  ;;  %v828_v23 = vadd.f32 %v826_v18, %v1793_v32 }
 0x6ba   :  { %v832_v24 = vsel %vm279_vm5, %v828_v23, -inf }
 0x6bb   :  { %833 = vmax.xlane.f32.xlu1 %v832_v24 }
 0x6cc   :  { %901 = vrot.lane.b32.xlu1 %v1784_v25, %s1676_s5 }
 0x6d0   :  { %1004 = vrot.lane.b32.xlu1 %v1763_v14, %s1677_s6 }
 0x6d4   :  { %1002 = vrot.lane.b32.xlu1 %v1763_v14, %s1678_s7 }
 0x748   :  { %v834_v26 = vpop.xlane.xlu1 %833 }
 0x749   :  { %v836_v29 = vsub.f32 %v828_v23, %v834_v26 }
 0x74b   :  { %v839_v30 = vmul.f32 1.442695, %v836_v29 }
 0x74c   :  { %v902_v27 = vpop.permute.xlu1 %901 }
 0x74d   :  { %v907_v28 = vsel %vm307_vm2, %v902_v27, 0  ;;  %1552 = vpow2.f32 %v839_v30 }
 0x74e   :  { %1461 = vmatpush3.bf16.msra.mxu1 %v907_v28 }
 0x74f   :  { %1472 = vmatprep.subr.bf16.mxu1 %v1670_v12 }
 0x750   :  { %v1005_v54 = vpop.permute.xlu1 %1004 }
 0x751   :  { %v1010_v56 = vsel %vm179_vm3, %v1005_v54, 0 }
 0x754   :  { %v1003_v57 = vpop.permute.xlu1 %1002 }
 0x757   :  { %v1553_v44 = vpop.eup %1552 }
 0x758   :  { %v844_v45 = vsel %vm279_vm5, %v1553_v44, 0.0 }
 0x77a   :  { %v668_v31 = vpop.f32.mrb[16].mxu0 }
 0x77b   :  { %v1886_v33 = vadd.f32 %v718_v10, %v668_v31  ;;  %v1434_v34 = vpop.f32.mrb[17].mxu0 }
 0x77c   :  { %v671_v35 = vpop.f32.mrb[18].mxu0 }
 0x77d   :  { %v1888_v36 = vadd.f32 %v721_v13, %v671_v35  ;;  %v1435_v37 = vpop.f32.mrb[19].mxu0 }
 0x782   :  { %v769_v38 = vpop.f32.mrb[20].mxu0 }
 0x783   :  { %v825_v14 = vmul.f32 0.125, %v769_v38  ;;  %v1446_v39 = vpop.f32.mrb[21].mxu0 }
 0x784   :  { %v772_v40 = vpop.f32.mrb[22].mxu0 }
 0x785   :  { %v1447_v41 = vpop.f32.mrb[23].mxu0  ;;  %v827_v42 = vadd.f32 %v825_v14, %v1793_v32 }
 0x787   :  { %v829_v43 = vsel %vm279_vm5, %v827_v42, -inf }
 0x788   :  { %830 = vmax.xlane.f32.xlu0 %v829_v43 }
 0x78c   :  { %845 = vadd.xlane.f32.xlu0 %v844_v45 }
 0x815   :  { %v831_v46 = vpop.xlane.xlu0 %830 }
 0x816   :  { %v835_v47 = vsub.f32 %v827_v42, %v831_v46 }
 0x818   :  { %v837_v48 = vmul.f32 1.442695, %v835_v47 }
 0x819   :  { %v846_v49 = vpop.xlane.xlu0 %845 }
 0x81a   :  { %1554 = vpow2.f32 %v837_v48 }
 0x81b   :  { %1556 = vrcp.f32 %v846_v49 }
 0x824   :  { %v1555_v50 = vpop.eup %1554 }
 0x825   :  { %v1557_v51 = vpop.eup %1556  ;;  %v841_v52 = vsel %vm279_vm5, %v1555_v50, 0.0 }
 0x826   :  { %v850_v53 = vmul.f32 %v1557_v51, %v1553_v44  ;;  %842 = vadd.xlane.f32.xlu0 %v841_v52 }
 0x828   :  { %v852_v55 = vpack.c.bf16 %v850_v53, %v850_v53 }
 0x82a   :  { %1463 = vmatmul.mubr.msk.bf16.vlgmr.msra.gmra.mrb[28].mxu1 %vm279_vm5, %v852_v55 }
 0x82b   :  { %1473 = vmatpush3.bf16.xpose.msra.mxu1 %v1010_v56  ;;  %1474 = vmatprep.mubr.msk.bf16.mxu1 %vm1671_vm1, %v1670_v12 }
 0x82c   :  { %1484 = vmatprep.subr.bf16.mxu1 %v1670_v12 }
 0x832   :  { %1475 = vmatmul.mubr.msk.bf16.vlgmr.msra.gmra.mrb[32].mxu1 %vm179_vm3, %v1003_v57 }
 0x833   :  { %1486 = vmatprep.mubr.msk.bf16.mxu1 %vm1671_vm1, %v1670_v12 }
 0x83c   :  { %853 = vrot.lane.b32.xlu0 %v1765_v16, %s1676_s5 }
 0x840   :  { %1054 = vrot.lane.b32.xlu0 %v1771_v20, %s1677_s6 }
 0x844   :  { %1052 = vrot.lane.b32.xlu0 %v1771_v20, %s1678_s7 }
 0x8b3   :  { %v843_v58 = vpop.xlane.xlu0 %842 }
 0x8b4   :  { %1558 = vrcp.f32 %v843_v58 }
 0x8b7   :  { %v854_v59 = vpop.permute.xlu0 %853 }
 0x8b8   :  { %v859_v60 = vsel %vm307_vm2, %v854_v59, 0 }
 0x8b9   :  { %1455 = vmatpush3.bf16.msra.mxu0 %v859_v60 }
 0x8ba   :  { %1466 = vmatprep.subr.bf16.mxu0 %v1670_v12 }
 0x8bb   :  { %v1055_v11 = vpop.permute.xlu0 %1054 }
 0x8bc   :  { %v1060_v19 = vsel %vm179_vm3, %v1055_v11, 0 }
 0x8be   :  { %v1559_v61 = vpop.eup %1558 }
 0x8bf   :  { %v849_v62 = vmul.f32 %v1559_v61, %v1555_v50  ;;  %v1053_v22 = vpop.permute.xlu0 %1052 }
 0x8c1   :  { %v851_v0 = vpack.c.bf16 %v849_v62, %v849_v62 }
 0x8c3   :  { %1457 = vmatmul.mubr.msk.bf16.vlgmr.msra.gmra.mrb[24].mxu0 %vm279_vm5, %v851_v0 }
 0x8c4   :  { %1467 = vmatpush3.bf16.msra.mxu0 %v1534_v63  ;;  %1468 = vmatprep.mubr.msk.bf16.mxu0 %vm1671_vm1, %v1670_v12 }
 0x8c5   :  { %1478 = vmatprep.subr.bf16.mxu0 %v1670_v12 }
 0x8fd   :  { %v943_v20 = vpop.f32.mrb[28].mxu1 }
 0x8fe   :  { %v1464_v1 = vpop.f32.mrb[29].mxu1 }
 0x8ff   :  { %v946_v2 = vpop.f32.mrb[30].mxu1  ;;  %v1341_v1 = vld [vmem:[%s1968_s3] ss:$0 sm:$0xff] }
 0x900   :  { %v1465_v3 = vpop.f32.mrb[31].mxu1 }
 0x905   :  { %v1046_v4 = vpop.f32.mrb[32].mxu1 }
 0x906   :  { %v1102_v5 = vmul.f32 0.125, %v1046_v4  ;;  %v1476_v6 = vpop.f32.mrb[33].mxu1 }
 0x907   :  { %v1049_v7 = vpop.f32.mrb[34].mxu1 }
 0x908   :  { %v1477_v8 = vpop.f32.mrb[35].mxu1  ;;  %v1104_v9 = vadd.f32 %v1102_v5, %v1793_v32 }
 0x90a   :  { %v1106_v10 = vsel %vm279_vm5, %v1104_v9, -inf }
 0x90b   :  { %1107 = vmax.xlane.f32.xlu1 %v1106_v10 }
 0x996   :  { %v895_v13 = vpop.f32.mrb[24].mxu0 }
 0x997   :  { %v949_v15 = vpack.c.bf16 %v943_v20, %v895_v13  ;;  %v1458_v17 = vpop.f32.mrb[25].mxu0 }
 0x998   :  { %v898_v18 = vpop.f32.mrb[26].mxu0  ;;  %v1108_v23 = vpop.xlane.xlu1 %1107 }
 0x999   :  { %v1459_v21 = vpop.f32.mrb[27].mxu0  ;;  %1469 = vmatmul.mubr.msk.bf16.vlgmr.msra.gmra.mrb[28].mxu0 %vm179_vm3, %v949_v15  ;;  %v1112_v24 = vsub.f32 %v1104_v9, %v1108_v23 }
 0x99a   :  { %1479 = vmatpush3.bf16.xpose.msra.mxu0 %v1060_v19  ;;  %1480 = vmatprep.mubr.msk.bf16.mxu0 %vm1671_vm1, %v1670_v12 }
 0x99b   :  { %1490 = vmatprep.subr.bf16.mxu0 %v1670_v12  ;;  %v1114_v26 = vmul.f32 1.442695, %v1112_v24 }
 0x99d   :  { %1560 = vpow2.f32 %v1114_v26 }
 0x9a1   :  { %1481 = vmatmul.mubr.msk.bf16.vlgmr.msra.gmra.mrb[32].mxu0 %vm179_vm3, %v1053_v22 }
 0x9a2   :  { %1492 = vmatprep.mubr.msk.bf16.mxu0 %vm1671_vm1, %v1670_v12 }
 0x9a7   :  { %v1561_v42 = vpop.eup %1560 }
 0xa6c   :  { %v993_v27 = vpop.f32.mrb[28].mxu0 }
 0xa6d   :  { %v1000_v28 = vadd.f32 %v993_v27, %v1886_v33  ;;  %v1470_v29 = vpop.f32.mrb[29].mxu0  ;;  %v1118_v33 = vsel %vm279_vm5, %v1561_v42, 0.0 }
 0xa6e   :  { %v996_v30 = vpop.f32.mrb[30].mxu0 }
 0xa6f   :  { %v1926_v31 = vadd.f32 %v996_v30, %v1888_v36  ;;  %v1471_v34 = vpop.f32.mrb[31].mxu0 }
 0xa74   :  { %v1096_v35 = vpop.f32.mrb[32].mxu0 }
 0xa75   :  { %v1103_v37 = vmul.f32 0.125, %v1096_v35  ;;  %v1482_v38 = vpop.f32.mrb[33].mxu0 }
 0xa76   :  { %v1099_v14 = vpop.f32.mrb[34].mxu0 }
 0xa77   :  { %v1483_v39 = vpop.f32.mrb[35].mxu0  ;;  %v1105_v40 = vadd.f32 %v1103_v37, %v1793_v32 }
 0xa79   :  { %v1109_v41 = vsel %vm279_vm5, %v1105_v40, -inf }
 0xa7a   :  { %1110 = vmax.xlane.f32.xlu0 %v1109_v41 }
 0xa7e   :  { %1119 = vadd.xlane.f32.xlu0 %v1118_v33 }
 0xa94   :  { %1130 = vrot.lane.b32.xlu0 %v1765_v16, %s1678_s7  ;;  %v1535_v16 = vld [vmem:[#allocation7 + $0x18] sm:$0xff]  }
 0xb07   :  { %v1111_v36 = vpop.xlane.xlu0 %1110 }
 0xb08   :  { %v1113_v43 = vsub.f32 %v1105_v40, %v1111_v36 }
 0xb0a   :  { %v1116_v44 = vmul.f32 1.442695, %v1113_v43 }
 0xb0b   :  { %v1120_v45 = vpop.xlane.xlu0 %1119 }
 0xb0c   :  { %1562 = vpow2.f32 %v1116_v44 }
 0xb0d   :  { %1564 = vrcp.f32 %v1120_v45 }
 0xb0f   :  { %v1131_v46 = vpop.permute.xlu0 %1130 }
 0xb10   :  { %v1136_v47 = vsel %vm307_vm2, %v1131_v46, 0 }
 0xb11   :  { %1485 = vmatpush3.bf16.msra.mxu1 %v1136_v47 }
 0xb12   :  { %1496 = vmatprep.subr.bf16.mxu1 %v1670_v12 }
 0xb16   :  { %v1563_v32 = vpop.eup %1562 }
 0xb17   :  { %v1565_v48 = vpop.eup %1564  ;;  %v1121_v49 = vsel %vm279_vm5, %v1563_v32, 0.0 }
 0xb18   :  { %v1126_v50 = vmul.f32 %v1565_v48, %v1561_v42  ;;  %1122 = vadd.xlane.f32.xlu1 %v1121_v49 }
 0xb1a   :  { %v1128_v51 = vpack.c.bf16 %v1126_v50, %v1126_v50 }
 0xb1c   :  { %1487 = vmatmul.mubr.msk.bf16.vlgmr.msra.gmra.mrb[36].mxu1 %vm279_vm5, %v1128_v51 }
 0xb1d   :  { %1498 = vmatprep.mubr.msk.bf16.mxu1 %vm1671_vm1, %v1670_v12  ;;  %1497 = vmatpush3.bf16.msra.mxu1 %v1535_v16 }
 0xb29   :  { %1178 = vrot.lane.b32.xlu1 %v1784_v25, %s1678_s7 }
 0xba5   :  { %v1123_v52 = vpop.xlane.xlu1 %1122 }
 0xba6   :  { %1566 = vrcp.f32 %v1123_v52 }
 0xba9   :  { %v1179_v53 = vpop.permute.xlu1 %1178 }
 0xbaa   :  { %v1184_v54 = vsel %vm307_vm2, %v1179_v53, 0 }
 0xbab   :  { %1491 = vmatpush3.bf16.msra.mxu0 %v1184_v54 }
 0xbb0   :  { %v1567_v55 = vpop.eup %1566 }
 0xbb1   :  { %v1127_v56 = vmul.f32 %v1567_v55, %v1563_v32 }
 0xbb3   :  { %v1129_v57 = vpack.c.bf16 %v1127_v56, %v1127_v56 }
 0xbb5   :  { %1493 = vmatmul.mubr.msk.bf16.vlgmr.msra.gmra.mrb[36].mxu0 %vm279_vm5, %v1129_v57 }
 0xbef   :  { %v1172_v58 = vpop.f32.mrb[36].mxu1 }
 0xbf0   :  { %v1488_v59 = vpop.f32.mrb[37].mxu1 }
 0xbf1   :  { %v1175_v60 = vpop.f32.mrb[38].mxu1 }
 0xbf2   :  { %v1489_v12 = vpop.f32.mrb[39].mxu1 }
 0xc88   :  { %v1220_v61 = vpop.f32.mrb[36].mxu0 }
 0xc89   :  { %v1226_v62 = vpack.c.bf16 %v1220_v61, %v1172_v58  ;;  %v1494_v25 = vpop.f32.mrb[37].mxu0 }
 0xc8a   :  { %v1223_v63 = vpop.f32.mrb[38].mxu0 }
 0xc8b   :  { %v1495_v0 = vpop.f32.mrb[39].mxu0  ;;  %1499 = vmatmul.mubr.msk.bf16.vlgmr.msra.gmra.mrb[40].mxu1 %vm179_vm3, %v1226_v62 }
 0xd5e   :  { %v1270_v20 = vpop.f32.mrb[40].mxu1 }
 0xd5f   :  { %v1277_v2 = vadd.f32 %v1270_v20, %v1000_v28  ;;  %v1500_v3 = vpop.f32.mrb[41].mxu1 }
 0xd60   :  { %v1273_v4 = vpop.f32.mrb[42].mxu1 }
 0xd61   :  { %v1286_v5 = vadd.f32 %v1341_v1, %v1277_v2  ;;  %v1278_v6 = vadd.f32 %v1273_v4, %v1926_v31  ;;  %v1501_v7 = vpop.f32.mrb[43].mxu1 }
 0xd63   :  { %1288 = vst.msk [vmem:[#allocation8] sm:$0xff] %vm111_vm0, %v1286_v5  ;;  %v1287_v8 = vadd.f32 %v1341_v1, %v1278_v6 }
 0xd65   :  { %1289 = vst.msk [vmem:[#allocation8 + $0x8] sm:$0xff] %vm111_vm0, %v1287_v8 }
 0xd66   :  { %1645 = shalt.err (!%p1642_p0)
}
 0xd67   :  { %s1646_s13 = scalar_lea.hbm %s1969_s4, 256 }
 0xd68   :  { %p1647_p1 = scmp.ne.s32.totalorder %s1969_s4, %s1646_s13  ;;  %p1650_p2 = scmp.lt.u32.totalorder %s1646_s13, %s1969_s4 }
 0xd6a   :  { %p1652_p3 = pnand %p1650_p2, %p1647_p1 }
 0xd6c   :  { %1655 = shalt.err (!%p1652_p3)
}
 0xd6d   :  { %1301 = dma.vmem_to_hbm [thread:$0]  %s1296_s11, 256, %s1969_s4, [#allocation4], %s1664_s27, %s1664_s27, %s1665_s28  }
 0xd6e   :  { %1660 = dma.done.wait [#allocation4], 256  }
 0xd6f   :  { %1661 = vsyncadd [#allocation4], 4294967040 }
 0xd70   :  { %1305 = vsyncpa [#allocation3], 1 }
 0xd71   :  { %1306 = vsyncpa [#allocation6], 1 }
 0xd72   :  { %1307 = vsyncpa [#allocation4], 1 }

</bundles_post_ra>
